<compile_context>
chip_gen: v5e
topology: v5e:2x2
jax: 0.10.0
libtpu: 0.0.40
codegen_flags: <defaults>
</compile_context>

<pallas_src>
import functools

import jax
import jax.numpy as jnp
from jax import lax
from jax.experimental import pallas as pl
from jax.experimental.pallas import tpu as pltpu


def _round_up(x: int, m: int) -> int:
    return ((x + m - 1) // m) * m


def toy_model_kernel(x_ref, m_ref, b_ref, o_ref, *, compute_dtype):
    # x_ref: (TB, F) input dtype, m_ref: (F, F) compute dtype (== W @ W.T),
    # b_ref: (1, F) f32, o_ref: (TB, F) out dtype.
    x = x_ref[...].astype(compute_dtype)      # in-kernel cast (free on the VPU)

    # Single fused matmul on the MXU: 'b f, f g -> b g', f32 accumulation.
    recons = jnp.dot(x, m_ref[...], preferred_element_type=jnp.float32)

    # Epilogue in f32 on the VPU: bias broadcast from a (1, F) row + relu.
    o_ref[...] = jnp.maximum(recons + b_ref[...], 0.0).astype(o_ref.dtype)


@functools.partial(jax.jit,
                   static_argnames=("block_b", "compute_dtype", "out_dtype"))
def toy_model_forward(x, w_tr, bias, *, block_b: int = 1024,
                      compute_dtype=jnp.float32, out_dtype=jnp.float32):
    """x: [B, F], w_tr: [F, D], bias: [F]  ->  [B, F] in out_dtype."""
    B, F = x.shape
    Fw, D = w_tr.shape
    assert F == Fw, (F, Fw)

    # Pre-fuse M = W_tr @ W_tr.T once (tiny: F x F), f32 accumulation, then
    # cast to the MXU compute dtype.  Contract over d of both operands so no
    # transpose is materialized.
    m = lax.dot_general(
        w_tr.astype(jnp.float32), w_tr.astype(jnp.float32),
        dimension_numbers=(((1,), (1,)), ((), ())),
        preferred_element_type=jnp.float32,
    ).astype(compute_dtype)

    bias2d = bias.reshape(1, F).astype(jnp.float32)   # epilogue stays f32

    # Batch tile: sublane-aligned for the compute dtype, capped at block_b.
    isz = jnp.dtype(compute_dtype).itemsize
    align = {4: 8, 2: 16, 1: 32}.get(isz, 8)
    tb = _round_up(min(block_b, B), align)
    grid = (pl.cdiv(B, tb),)     # ragged last tile handled by Pallas (no pad)

    flops = 2 * B * F * F                       # one fused (B,F)@(F,F) matmul
    bytes_accessed = (B * F * x.dtype.itemsize          # x in (no extra cast pass)
                      + F * F * isz                      # M (resident, loaded once)
                      + F * 4                            # bias
                      + B * F * jnp.dtype(out_dtype).itemsize)  # out

    out = pl.pallas_call(
        functools.partial(toy_model_kernel, compute_dtype=compute_dtype),
        out_shape=jax.ShapeDtypeStruct((B, F), out_dtype),
        grid_spec=pltpu.PrefetchScalarGridSpec(
            num_scalar_prefetch=0,
            grid=grid,
            in_specs=[
                # x: one (tb, F) tile per grid step — double-buffered.
                pl.BlockSpec((tb, F), lambda i: (i, 0)),
                # M and bias: same block every step — stay resident in VMEM.
                pl.BlockSpec((F, F), lambda i: (0, 0)),
                pl.BlockSpec((1, F), lambda i: (0, 0)),
            ],
            out_specs=pl.BlockSpec((tb, F), lambda i: (i, 0)),
        ),
        compiler_params=pltpu.CompilerParams(
            # Batch tiles are independent -> megacore / 2-TC sharding on v7x.
            dimension_semantics=("parallel",),
        ),
        cost_estimate=pl.CostEstimate(
            flops=flops, transcendentals=0, bytes_accessed=bytes_accessed),
    )(x, m, bias2d)

    return out


if __name__ == "__main__":
    # Small, deterministic setup consistent with ToyModel(d_model, n_features).
    d_model = 32
    n_features = 128
    batch = 200  # not a multiple of the batch tile -> exercises the ragged grid

    key = jax.random.PRNGKey(0)
    kx, kw, kb = jax.random.split(key, 3)

    # xavier_normal_ on W_tr of shape (n_features, d_model):
    # std = sqrt(2 / (fan_in + fan_out)).
    xavier_std = (2.0 / (n_features + d_model)) ** 0.5
    w_tr = jax.random.normal(kw, (n_features, d_model), jnp.float32) * xavier_std
    # Bias is zero-init in the module; use a small non-zero bias here so the
    # bias-add path is actually exercised by the check.
    bias = 0.01 * jax.random.normal(kb, (n_features,), jnp.float32)

    x = jax.random.uniform(kx, (batch, n_features), dtype=jnp.float32)

    # Reference in plain JAX (matches the PyTorch forward exactly, two matmuls).
    ref = jnp.maximum((x @ w_tr) @ w_tr.T + bias[None, :], 0.0)

    # 1) f32 path (fused W@W.T only reorders f32 rounding vs the two-step ref).
    out_f32 = jax.block_until_ready(toy_model_forward(x, w_tr, bias))
    assert out_f32.shape == (batch, n_features)
    assert out_f32.dtype == jnp.float32
    assert jnp.allclose(out_f32, ref, atol=2e-4, rtol=2e-4)

    # 2) Fast path: bf16 MXU operands + bf16 output, f32 accumulation/epilogue.
    out_bf16 = jax.block_until_ready(
        toy_model_forward(x, w_tr, bias,
                          compute_dtype=jnp.bfloat16, out_dtype=jnp.bfloat16))
    assert out_bf16.shape == (batch, n_features)
    assert out_bf16.dtype == jnp.bfloat16
    assert jnp.allclose(out_bf16.astype(jnp.float32), ref, atol=5e-2, rtol=5e-2)

    print("KERNEL_OK")
</pallas_src>

<mosaic_0001>
module attributes {stable_mosaic.version = 11 : i64} {
  func.func @toy_model_kernel(%arg0: i32, %arg1: memref<200x128xf32, #tpu.memory_space<vmem>>, %arg2: memref<128x128xf32, #tpu.memory_space<vmem>>, %arg3: memref<1x128xf32, #tpu.memory_space<vmem>>, %arg4: memref<200x128xf32, #tpu.memory_space<vmem>>) attributes {dimension_semantics = [#tpu.dimension_semantics<parallel>], iteration_bounds = array<i64: 1>, scalar_prefetch = 0 : i64, scratch_operands = 0 : i64, tpu.core_type = #tpu.core_type<tc>, window_params = [{transform_indices = @transform_0, window_bounds = array<i64: 200, 128>}, {pipeline_mode = #tpu.pipeline_mode<synchronous>, transform_indices = @transform_1, window_bounds = array<i64: 128, 128>}, {pipeline_mode = #tpu.pipeline_mode<synchronous>, transform_indices = @transform_2, window_bounds = array<i64: 1, 128>}, {transform_indices = @transform_3, window_bounds = array<i64: 200, 128>}]} {
    %c0 = arith.constant 0 : index
    %c0_0 = arith.constant 0 : index
    %0 = vector.load %arg1[%c0, %c0_0] : memref<200x128xf32, #tpu.memory_space<vmem>>, vector<200x128xf32>
    %c0_1 = arith.constant 0 : index
    %c0_2 = arith.constant 0 : index
    %1 = vector.load %arg2[%c0_1, %c0_2] : memref<128x128xf32, #tpu.memory_space<vmem>>, vector<128x128xf32>
    %cst = arith.constant dense<0.000000e+00> : vector<200x128xf32>
    %2 = tpu.matmul %0, %1, %cst {dimension_numbers = #tpu.dot_dimension_numbers<[1], [0], [0], [1], [0, 0, 1, 1], [], []>} : vector<200x128xf32>, vector<128x128xf32>, vector<200x128xf32> -> vector<200x128xf32>
    %c0_3 = arith.constant 0 : index
    %c0_4 = arith.constant 0 : index
    %3 = vector.load %arg3[%c0_3, %c0_4] : memref<1x128xf32, #tpu.memory_space<vmem>>, vector<1x128xf32>
    %4 = vector.broadcast %3 : vector<1x128xf32> to vector<200x128xf32>
    %5 = arith.addf %2, %4 : vector<200x128xf32>
    %cst_5 = arith.constant 0.000000e+00 : f32
    %6 = vector.broadcast %cst_5 : f32 to vector<200x128xf32>
    %7 = arith.maximumf %5, %6 : vector<200x128xf32>
    %c0_6 = arith.constant 0 : index
    %c0_7 = arith.constant 0 : index
    %8 = vector.load %arg4[%c0_6, %c0_7] : memref<200x128xf32, #tpu.memory_space<vmem>>, vector<200x128xf32>
    tpu.vector_store %arg4[%c0_6, %c0_7], %7 {strides = array<i32>} : memref<200x128xf32, #tpu.memory_space<vmem>>, vector<200x128xf32>,
    return
  }
  func.func @transform_0(%arg0: i32) -> (i32, i32) {
    %c0_i32 = arith.constant 0 : i32
    %c0_i32_0 = arith.constant 0 : i32
    return %arg0, %c0_i32 : i32, i32
  }
  func.func @transform_1(%arg0: i32) -> (i32, i32) {
    %c0_i32 = arith.constant 0 : i32
    %c0_i32_0 = arith.constant 0 : i32
    %c0_i32_1 = arith.constant 0 : i32
    return %c0_i32, %c0_i32_0 : i32, i32
  }
  func.func @transform_2(%arg0: i32) -> (i32, i32) {
    %c0_i32 = arith.constant 0 : i32
    %c0_i32_0 = arith.constant 0 : i32
    %c0_i32_1 = arith.constant 0 : i32
    return %c0_i32, %c0_i32_0 : i32, i32
  }
  func.func @transform_3(%arg0: i32) -> (i32, i32) {
    %c0_i32 = arith.constant 0 : i32
    %c0_i32_0 = arith.constant 0 : i32
    return %arg0, %c0_i32 : i32, i32
  }
}

</mosaic_0001>

<bundles_post_ra>
// kernel: toy_model_forward.1
= control target key start
LH: loop header
LB: loop body
LE: loop exit
PB: predicated region body
PF: predicated region fallthrough
CT: control target
= control target key end

     0   :  { %8 = vsyncpa [#allocation3], 0  ;;  %s456_s0 = inlined_call_operand.hbm [shape: f32[200,128], index: 0, kind: input, shape index: {}]   ;;  %s457_s1 = inlined_call_operand.vmem [shape: f32[128,128], index: 1, kind: input, shape index: {}]   ;;  %s458_s2 = inlined_call_operand.vmem [shape: f32[1,128], index: 2, kind: input, shape index: {}]   ;;  %s459_s3 = inlined_call_operand.hbm [shape: f32[200,128], index: 3, kind: output, shape index: {}]  }
   0x1   :  { %9 = vsyncpa [#allocation4], 0  ;;  %s14_s14 = sshll.u32 %s456_s0, 4  ;;  %s342_s15 = smov [#allocation2]   ;;  %s15_s14 = int_to_ptr.hbm [resolvable:$true] %s14_s14 }
   0x2   :  { %s16_s16 = sshll.u32 %s342_s15, 4  ;;  %s343_s17 = smov 128   ;;  %s17_s16 = int_to_ptr.vmem [resolvable:$true] %s16_s16 }
   0x3   :  { %s344_s18 = smov 8  }
   0x4   :  { %22 = dma.hbm_to_vmem [thread:$0]  %s15_s14, 3200, %s17_s16, [#allocation3], %s343_s17, %s343_s17, %s344_s18  }
   0x5   :  { %338 = dma.done.wait [#allocation3], 3200  }
   0x6   :  { %339 = vsyncadd [#allocation3], 4294964096  ;;  %v71_v0 = vld [vmem:[%s457_s1 + $0x78] sm:$0xff]  ;;  %v70_v1 = vld [vmem:[%s457_s1 + $0x70] sm:$0xff]  ;;  %s224_s28 = sshll.u32 %s459_s3, 4  ;;  %s225_s28 = int_to_ptr.hbm [resolvable:$true] %s224_s28 }
   0x7   :  { %238 = vmatpush.msra.mxu2 %v71_v0  ;;  %239 = vmatpush.msra.mxu3 %v71_v0  ;;  %v69_v2 = vld [vmem:[%s457_s1 + $0x68] sm:$0xff]  ;;  %v68_v3 = vld [vmem:[%s457_s1 + $0x60] sm:$0xff]  ;;  %v67_v4 = vld [vmem:[%s457_s1 + $0x58] sm:$0xff] }
   0x8   :  { %237 = vmatpush.msra.mxu1 %v71_v0  ;;  %76 = vmatpush.msra.mxu0 %v71_v0  ;;  %v66_v5 = vld [vmem:[%s457_s1 + $0x50] sm:$0xff]  ;;  %v65_v6 = vld [vmem:[%s457_s1 + $0x48] sm:$0xff]  ;;  %v64_v7 = vld [vmem:[%s457_s1 + $0x40] sm:$0xff] }
   0x9   :  { %241 = vmatpush.msra.mxu2 %v70_v1  ;;  %242 = vmatpush.msra.mxu3 %v70_v1  ;;  %v63_v8 = vld [vmem:[%s457_s1 + $0x38] sm:$0xff]  ;;  %v62_v9 = vld [vmem:[%s457_s1 + $0x30] sm:$0xff]  ;;  %v61_v10 = vld [vmem:[%s457_s1 + $0x28] sm:$0xff] }
   0xa   :  { %240 = vmatpush.msra.mxu1 %v70_v1  ;;  %77 = vmatpush.msra.mxu0 %v70_v1  ;;  %v60_v11 = vld [vmem:[%s457_s1 + $0x20] sm:$0xff]  ;;  %v59_v12 = vld [vmem:[%s457_s1 + $0x18] sm:$0xff]  ;;  %v58_v13 = vld [vmem:[%s457_s1 + $0x10] sm:$0xff] }
   0xb   :  { %244 = vmatpush.msra.mxu2 %v69_v2  ;;  %245 = vmatpush.msra.mxu3 %v69_v2  ;;  %v57_v14 = vld [vmem:[%s457_s1 + $0x8] sm:$0xff]  ;;  %v56_v15 = vld [vmem:[%s457_s1] sm:$0xff]  ;;  %v42_v16 = vld [vmem:[#allocation2 + $0x58] sm:$0xff] }
   0xc   :  { %243 = vmatpush.msra.mxu1 %v69_v2  ;;  %78 = vmatpush.msra.mxu0 %v69_v2  ;;  %v49_v17 = vld [vmem:[#allocation2 + $0x90] sm:$0xff]  ;;  %v36_v18 = vld [vmem:[#allocation2 + $0x28] sm:$0xff]  ;;  %v31_v19 = vld [vmem:[#allocation2] sm:$0xff] }
   0xd   :  { %247 = vmatpush.msra.mxu2 %v68_v3  ;;  %248 = vmatpush.msra.mxu3 %v68_v3  ;;  %v43_v20 = vld [vmem:[#allocation2 + $0x60] sm:$0xff]  ;;  %v50_v21 = vld [vmem:[#allocation2 + $0x98] sm:$0xff]  ;;  %v37_v22 = vld [vmem:[#allocation2 + $0x30] sm:$0xff] }
   0xe   :  { %246 = vmatpush.msra.mxu1 %v68_v3  ;;  %79 = vmatpush.msra.mxu0 %v68_v3  ;;  %v32_v23 = vld [vmem:[#allocation2 + $0x8] sm:$0xff]  ;;  %v51_v25 = vld [vmem:[#allocation2 + $0xa0] sm:$0xff]  ;;  %v38_v26 = vld [vmem:[#allocation2 + $0x38] sm:$0xff] }
   0xf   :  { %250 = vmatpush.msra.mxu2 %v67_v4  ;;  %251 = vmatpush.msra.mxu3 %v67_v4  ;;  %v44_v24 = vld [vmem:[#allocation2 + $0x68] sm:$0xff]  ;;  %v33_v27 = vld [vmem:[#allocation2 + $0x10] sm:$0xff]  ;;  %v39_v30 = vld [vmem:[#allocation2 + $0x40] sm:$0xff] }
  0x10   :  { %249 = vmatpush.msra.mxu1 %v67_v4  ;;  %80 = vmatpush.msra.mxu0 %v67_v4  ;;  %v45_v28 = vld [vmem:[#allocation2 + $0x70] sm:$0xff]  ;;  %v52_v29 = vld [vmem:[#allocation2 + $0xa8] sm:$0xff]  ;;  %v34_v31 = vld [vmem:[#allocation2 + $0x18] sm:$0xff] }
  0x11   :  { %253 = vmatpush.msra.mxu2 %v66_v5  ;;  %254 = vmatpush.msra.mxu3 %v66_v5  ;;  %v46_v32 = vld [vmem:[#allocation2 + $0x78] sm:$0xff]  ;;  %v53_v33 = vld [vmem:[#allocation2 + $0xb0] sm:$0xff]  ;;  %v40_v34 = vld [vmem:[#allocation2 + $0x48] sm:$0xff] }
  0x12   :  { %252 = vmatpush.msra.mxu1 %v66_v5  ;;  %81 = vmatpush.msra.mxu0 %v66_v5  ;;  %v35_v35 = vld [vmem:[#allocation2 + $0x20] sm:$0xff]  ;;  %v54_v37 = vld [vmem:[#allocation2 + $0xb8] sm:$0xff]  ;;  %v41_v38 = vld [vmem:[#allocation2 + $0x50] sm:$0xff] }
  0x13   :  { %256 = vmatpush.msra.mxu2 %v65_v6  ;;  %257 = vmatpush.msra.mxu3 %v65_v6  ;;  %v47_v36 = vld [vmem:[#allocation2 + $0x80] sm:$0xff]  ;;  %v48_v39 = vld [vmem:[#allocation2 + $0x88] sm:$0xff] }
  0x14   :  { %255 = vmatpush.msra.mxu1 %v65_v6  ;;  %82 = vmatpush.msra.mxu0 %v65_v6  ;;  %v55_v40 = vld [vmem:[#allocation2 + $0xc0] sm:$0xff] }
  0x15   :  { %259 = vmatpush.msra.mxu2 %v64_v7  ;;  %260 = vmatpush.msra.mxu3 %v64_v7  ;;  %v423_v41 = vld [vmem:[%s458_s2] ss:$0 sm:$0xff]  ;;  %s345_s2 = smov [#allocation5]  }
  0x16   :  { %258 = vmatpush.msra.mxu1 %v64_v7  ;;  %83 = vmatpush.msra.mxu0 %v64_v7  ;;  %s222_s25 = sshll.u32 %s345_s2, 4  ;;  %s223_s25 = int_to_ptr.vmem [resolvable:$true] %s222_s25 }
  0x17   :  { %262 = vmatpush.msra.mxu2 %v63_v8  ;;  %263 = vmatpush.msra.mxu3 %v63_v8 }
  0x18   :  { %261 = vmatpush.msra.mxu1 %v63_v8  ;;  %84 = vmatpush.msra.mxu0 %v63_v8 }
  0x19   :  { %265 = vmatpush.msra.mxu2 %v62_v9  ;;  %266 = vmatpush.msra.mxu3 %v62_v9 }
  0x1a   :  { %264 = vmatpush.msra.mxu1 %v62_v9  ;;  %85 = vmatpush.msra.mxu0 %v62_v9 }
  0x1b   :  { %268 = vmatpush.msra.mxu2 %v61_v10  ;;  %269 = vmatpush.msra.mxu3 %v61_v10 }
  0x1c   :  { %267 = vmatpush.msra.mxu1 %v61_v10  ;;  %86 = vmatpush.msra.mxu0 %v61_v10 }
  0x1d   :  { %271 = vmatpush.msra.mxu2 %v60_v11  ;;  %272 = vmatpush.msra.mxu3 %v60_v11 }
  0x1e   :  { %270 = vmatpush.msra.mxu1 %v60_v11  ;;  %87 = vmatpush.msra.mxu0 %v60_v11 }
  0x1f   :  { %274 = vmatpush.msra.mxu2 %v59_v12  ;;  %275 = vmatpush.msra.mxu3 %v59_v12 }
  0x20   :  { %273 = vmatpush.msra.mxu1 %v59_v12  ;;  %88 = vmatpush.msra.mxu0 %v59_v12 }
  0x21   :  { %277 = vmatpush.msra.mxu2 %v58_v13  ;;  %278 = vmatpush.msra.mxu3 %v58_v13 }
  0x22   :  { %276 = vmatpush.msra.mxu1 %v58_v13  ;;  %89 = vmatpush.msra.mxu0 %v58_v13 }
  0x23   :  { %280 = vmatpush.msra.mxu2 %v57_v14  ;;  %281 = vmatpush.msra.mxu3 %v57_v14 }
  0x24   :  { %279 = vmatpush.msra.mxu1 %v57_v14  ;;  %90 = vmatpush.msra.mxu0 %v57_v14 }
  0x25   :  { %283 = vmatpush.msra.mxu2 %v56_v15  ;;  %284 = vmatpush.msra.mxu3 %v56_v15 }
  0x26   :  { %125 = vmatmul.f32.vlgmr.msra.gmra.mxu2 %v42_v16  ;;  %146 = vmatmul.f32.vlgmr.msra.gmra.mxu3 %v49_v17 }
  0x27   :  { %282 = vmatpush.msra.mxu1 %v56_v15  ;;  %91 = vmatpush.msra.mxu0 %v56_v15 }
  0x28   :  { %107 = vmatmul.f32.vlgmr.msra.gmra.mxu1 %v36_v18  ;;  %92 = vmatmul.f32.vlgmr.msra.gmra.mxu0 %v31_v19 }
  0x2e   :  { %128 = vmatmul.f32.gmra.mxu2 %v43_v20  ;;  %149 = vmatmul.f32.gmra.mxu3 %v50_v21 }
  0x30   :  { %110 = vmatmul.f32.gmra.mxu1 %v37_v22  ;;  %95 = vmatmul.f32.gmra.mxu0 %v32_v23 }
  0x36   :  { %131 = vmatmul.f32.gmra.mxu2 %v44_v24  ;;  %152 = vmatmul.f32.gmra.mxu3 %v51_v25 }
  0x38   :  { %113 = vmatmul.f32.gmra.mxu1 %v38_v26  ;;  %98 = vmatmul.f32.gmra.mxu0 %v33_v27 }
  0x3e   :  { %134 = vmatmul.f32.gmra.mxu2 %v45_v28  ;;  %155 = vmatmul.f32.gmra.mxu3 %v52_v29 }
  0x40   :  { %116 = vmatmul.f32.gmra.mxu1 %v39_v30  ;;  %101 = vmatmul.f32.gmra.mxu0 %v34_v31 }
  0x46   :  { %137 = vmatmul.f32.gmra.mxu2 %v46_v32  ;;  %158 = vmatmul.f32.gmra.mxu3 %v53_v33 }
  0x48   :  { %119 = vmatmul.f32.gmra.mxu1 %v40_v34  ;;  %104 = vmatmul.f32.gmra.mxu0 %v35_v35 }
  0x4e   :  { %140 = vmatmul.f32.gmra.mxu2 %v47_v36  ;;  %161 = vmatmul.f32.gmra.mxu3 %v54_v37 }
  0x50   :  { %122 = vmatmul.f32.gmra.mxu1 %v41_v38 }
  0x56   :  { %143 = vmatmul.f32.gmra.mxu2 %v48_v39  ;;  %164 = vmatmul.f32.gmra.mxu3 %v55_v40 }
  0xa5   :  { %v108_v42 = vpop.f32.mrf.mxu1  ;;  %v93_v43 = vpop.f32.mrf.mxu0 }
  0xa6   :  { %v109_v44 = vadd.f32 %v423_v41, %v108_v42  ;;  %v94_v45 = vadd.f32 %v423_v41, %v93_v43 }
  0xa8   :  { %v173_v46 = vmax.f32 %v109_v44, 0.0  ;;  %v168_v47 = vmax.f32 %v94_v45, 0.0 }
  0xa9   :  { %v126_v48 = vpop.f32.mrf.mxu2  ;;  %v147_v49 = vpop.f32.mrf.mxu3 }
  0xaa   :  { %v127_v50 = vadd.f32 %v423_v41, %v126_v48  ;;  %v148_v51 = vadd.f32 %v423_v41, %v147_v49  ;;  %198 = vst [vmem:[#allocation5 + $0x28] sm:$0xff] %v173_v46 }
  0xab   :  { %193 = vst [vmem:[#allocation5] sm:$0xff] %v168_v47 }
  0xac   :  { %v179_v52 = vmax.f32 %v127_v50, 0.0  ;;  %v186_v53 = vmax.f32 %v148_v51, 0.0 }
  0xad   :  { %v111_v54 = vpop.f32.mrf.mxu1  ;;  %v96_v55 = vpop.f32.mrf.mxu0 }
  0xae   :  { %204 = vst [vmem:[#allocation5 + $0x58] sm:$0xff] %v179_v52  ;;  %v112_v56 = vadd.f32 %v423_v41, %v111_v54  ;;  %v97_v57 = vadd.f32 %v423_v41, %v96_v55 }
  0xaf   :  { %211 = vst [vmem:[#allocation5 + $0x90] sm:$0xff] %v186_v53 }
  0xb0   :  { %v174_v58 = vmax.f32 %v112_v56, 0.0  ;;  %v169_v59 = vmax.f32 %v97_v57, 0.0 }
  0xb1   :  { %v129_v60 = vpop.f32.mrf.mxu2  ;;  %v150_v61 = vpop.f32.mrf.mxu3 }
  0xb2   :  { %v130_v62 = vadd.f32 %v423_v41, %v129_v60  ;;  %v151_v63 = vadd.f32 %v423_v41, %v150_v61  ;;  %199 = vst [vmem:[#allocation5 + $0x30] sm:$0xff] %v174_v58 }
  0xb3   :  { %194 = vst [vmem:[#allocation5 + $0x8] sm:$0xff] %v169_v59 }
  0xb4   :  { %v180_v0 = vmax.f32 %v130_v62, 0.0  ;;  %v187_v1 = vmax.f32 %v151_v63, 0.0 }
  0xb5   :  { %v114_v2 = vpop.f32.mrf.mxu1  ;;  %v99_v3 = vpop.f32.mrf.mxu0 }
  0xb6   :  { %205 = vst [vmem:[#allocation5 + $0x60] sm:$0xff] %v180_v0  ;;  %v115_v4 = vadd.f32 %v423_v41, %v114_v2  ;;  %v100_v5 = vadd.f32 %v423_v41, %v99_v3 }
  0xb7   :  { %212 = vst [vmem:[#allocation5 + $0x98] sm:$0xff] %v187_v1 }
  0xb8   :  { %v175_v6 = vmax.f32 %v115_v4, 0.0  ;;  %v170_v7 = vmax.f32 %v100_v5, 0.0 }
  0xb9   :  { %v132_v8 = vpop.f32.mrf.mxu2  ;;  %v153_v9 = vpop.f32.mrf.mxu3 }
  0xba   :  { %v133_v10 = vadd.f32 %v423_v41, %v132_v8  ;;  %v154_v11 = vadd.f32 %v423_v41, %v153_v9  ;;  %200 = vst [vmem:[#allocation5 + $0x38] sm:$0xff] %v175_v6 }
  0xbb   :  { %195 = vst [vmem:[#allocation5 + $0x10] sm:$0xff] %v170_v7 }
  0xbc   :  { %v181_v12 = vmax.f32 %v133_v10, 0.0  ;;  %v188_v13 = vmax.f32 %v154_v11, 0.0 }
  0xbd   :  { %v117_v14 = vpop.f32.mrf.mxu1  ;;  %v102_v15 = vpop.f32.mrf.mxu0 }
  0xbe   :  { %206 = vst [vmem:[#allocation5 + $0x68] sm:$0xff] %v181_v12  ;;  %v118_v16 = vadd.f32 %v423_v41, %v117_v14  ;;  %v103_v17 = vadd.f32 %v423_v41, %v102_v15 }
  0xbf   :  { %213 = vst [vmem:[#allocation5 + $0xa0] sm:$0xff] %v188_v13 }
  0xc0   :  { %v176_v18 = vmax.f32 %v118_v16, 0.0  ;;  %v171_v19 = vmax.f32 %v103_v17, 0.0 }
  0xc1   :  { %v135_v20 = vpop.f32.mrf.mxu2  ;;  %v156_v21 = vpop.f32.mrf.mxu3 }
  0xc2   :  { %v136_v22 = vadd.f32 %v423_v41, %v135_v20  ;;  %v157_v23 = vadd.f32 %v423_v41, %v156_v21  ;;  %201 = vst [vmem:[#allocation5 + $0x40] sm:$0xff] %v176_v18 }
  0xc3   :  { %196 = vst [vmem:[#allocation5 + $0x18] sm:$0xff] %v171_v19 }
  0xc4   :  { %v182_v24 = vmax.f32 %v136_v22, 0.0  ;;  %v189_v25 = vmax.f32 %v157_v23, 0.0 }
  0xc5   :  { %v120_v26 = vpop.f32.mrf.mxu1  ;;  %v105_v27 = vpop.f32.mrf.mxu0 }
  0xc6   :  { %207 = vst [vmem:[#allocation5 + $0x70] sm:$0xff] %v182_v24  ;;  %v121_v28 = vadd.f32 %v423_v41, %v120_v26  ;;  %v106_v29 = vadd.f32 %v423_v41, %v105_v27 }
  0xc7   :  { %214 = vst [vmem:[#allocation5 + $0xa8] sm:$0xff] %v189_v25 }
  0xc8   :  { %v177_v30 = vmax.f32 %v121_v28, 0.0  ;;  %v172_v31 = vmax.f32 %v106_v29, 0.0 }
  0xc9   :  { %v138_v32 = vpop.f32.mrf.mxu2  ;;  %v159_v33 = vpop.f32.mrf.mxu3 }
  0xca   :  { %v139_v34 = vadd.f32 %v423_v41, %v138_v32  ;;  %v160_v35 = vadd.f32 %v423_v41, %v159_v33  ;;  %202 = vst [vmem:[#allocation5 + $0x48] sm:$0xff] %v177_v30 }
  0xcb   :  { %197 = vst [vmem:[#allocation5 + $0x20] sm:$0xff] %v172_v31 }
  0xcc   :  { %v183_v36 = vmax.f32 %v139_v34, 0.0  ;;  %v190_v37 = vmax.f32 %v160_v35, 0.0 }
  0xcd   :  { %v123_v38 = vpop.f32.mrf.mxu1 }
  0xce   :  { %208 = vst [vmem:[#allocation5 + $0x78] sm:$0xff] %v183_v36  ;;  %v124_v39 = vadd.f32 %v423_v41, %v123_v38 }
  0xcf   :  { %215 = vst [vmem:[#allocation5 + $0xb0] sm:$0xff] %v190_v37 }
  0xd0   :  { %v178_v40 = vmax.f32 %v124_v39, 0.0 }
  0xd1   :  { %v141_v42 = vpop.f32.mrf.mxu2  ;;  %v162_v43 = vpop.f32.mrf.mxu3 }
  0xd2   :  { %v142_v44 = vadd.f32 %v423_v41, %v141_v42  ;;  %v163_v45 = vadd.f32 %v423_v41, %v162_v43  ;;  %203 = vst [vmem:[#allocation5 + $0x50] sm:$0xff] %v178_v40 }
  0xd4   :  { %v184_v46 = vmax.f32 %v142_v44, 0.0  ;;  %v191_v47 = vmax.f32 %v163_v45, 0.0 }
  0xd6   :  { %209 = vst [vmem:[#allocation5 + $0x80] sm:$0xff] %v184_v46 }
  0xd7   :  { %216 = vst [vmem:[#allocation5 + $0xb8] sm:$0xff] %v191_v47 }
  0xd9   :  { %v144_v48 = vpop.f32.mrf.mxu2  ;;  %v165_v49 = vpop.f32.mrf.mxu3 }
  0xda   :  { %v145_v50 = vadd.f32 %v423_v41, %v144_v48  ;;  %v166_v51 = vadd.f32 %v423_v41, %v165_v49 }
  0xdc   :  { %v185_v52 = vmax.f32 %v145_v50, 0.0  ;;  %v192_v53 = vmax.f32 %v166_v51, 0.0 }
  0xde   :  { %210 = vst [vmem:[#allocation5 + $0x88] sm:$0xff] %v185_v52 }
  0xdf   :  { %217 = vst [vmem:[#allocation5 + $0xc0] sm:$0xff] %v192_v53 }
  0xe0   :  { %230 = dma.vmem_to_hbm [thread:$0]  %s223_s25, 3200, %s225_s28, [#allocation4], %s343_s17, %s343_s17, %s344_s18  }
  0xe1   :  { %340 = dma.done.wait [#allocation4], 3200  }
  0xe2   :  { %341 = vsyncadd [#allocation4], 4294964096 }
  0xe3   :  { %235 = vsyncpa [#allocation3], 1 }
  0xe4   :  { %236 = vsyncpa [#allocation4], 1 }

</bundles_post_ra>
